<compile_context>
chip_gen: v6e
topology: v6e:2x2x1
jax: 0.10.0
libtpu: 0.0.40
codegen_flags: <defaults>
</compile_context>

<pallas_src>
import jax
import jax.numpy as jnp
from jax.experimental import pallas as pl
from jax.experimental.pallas import tpu as pltpu


def _round_up(n, m):
    return ((n + m - 1) // m) * m


def mlp_kernel(x_ref, w1_ref, b1_ref, w2_ref, b2_ref,
               w3_ref, b3_ref, w4_ref, b4_ref, o_ref):
    # One batch tile per grid step; all weights/biases are VMEM-resident.
    x = x_ref[...]

    h = jnp.dot(x, w1_ref[...], preferred_element_type=jnp.float32) + b1_ref[...]
    h = jnp.maximum(h, 0.0)

    h = jnp.dot(h, w2_ref[...], preferred_element_type=jnp.float32) + b2_ref[...]
    h = jnp.maximum(h, 0.0)

    h = jnp.dot(h, w3_ref[...], preferred_element_type=jnp.float32) + b3_ref[...]
    h = jnp.maximum(h, 0.0)

    out = jnp.dot(h, w4_ref[...], preferred_element_type=jnp.float32) + b4_ref[...]
    o_ref[...] = out.astype(o_ref.dtype)   # lane-dense (TILE_M, 128) store


def mlp_forward(x, params, *, tile_m=256):
    """x: (B, n_states) float32. params: w1..w4 stored (in,out), b1..b4 (1,out)."""
    B, n_states = x.shape
    n_actions = params["w4"].shape[1]

    # ---- pad the final output features to 128 lanes (lane-dense stores) ----
    out_pad = _round_up(max(n_actions, 128), 128)
    w4, b4 = params["w4"], params["b4"]
    if out_pad != n_actions:
        w4 = jnp.pad(w4, ((0, 0), (0, out_pad - n_actions)))
        b4 = jnp.pad(b4, ((0, 0), (0, out_pad - n_actions)))

    # ---- batch tiling: sublane-aligned tile, zero-pad batch to a multiple ----
    tile_m = min(tile_m, _round_up(B, 8))
    b_pad = _round_up(B, tile_m)
    x_p = jnp.pad(x, ((0, b_pad - B), (0, 0))) if b_pad != B else x
    n_tiles = b_pad // tile_m

    operands = (x_p,
                params["w1"], params["b1"],
                params["w2"], params["b2"],
                params["w3"], params["b3"],
                w4, b4)

    # x / out tiled over batch; weights & biases have a constant index_map so
    # they are fetched once and stay resident across all grid steps.
    const_map = lambda i: (0, 0)
    in_specs = [pl.BlockSpec((tile_m, n_states), lambda i: (i, 0))]
    for arr in operands[1:]:
        in_specs.append(pl.BlockSpec(arr.shape, const_map))
    out_specs = pl.BlockSpec((tile_m, out_pad), lambda i: (i, 0))

    flops = 2 * b_pad * (n_states * params["w1"].shape[1]
                         + params["w2"].shape[0] * params["w2"].shape[1]
                         + params["w3"].shape[0] * params["w3"].shape[1]
                         + params["w4"].shape[0] * out_pad)
    bytes_accessed = 4 * (x_p.size + b_pad * out_pad
                          + sum(int(a.size) for a in operands[1:]))

    out_padded = pl.pallas_call(
        mlp_kernel,
        out_shape=jax.ShapeDtypeStruct((b_pad, out_pad), jnp.float32),
        grid=(n_tiles,),
        in_specs=in_specs,
        out_specs=out_specs,
        compiler_params=pltpu.CompilerParams(
            dimension_semantics=("parallel",)),
        cost_estimate=pl.CostEstimate(
            flops=flops, transcendentals=0, bytes_accessed=bytes_accessed),
    )(*operands)

    return out_padded[:B, :n_actions]


def init_params(key, n_states, n_actions, hidden_dim=32):
    """Deterministic init mimicking nn.Linear's U(-1/sqrt(in), 1/sqrt(in))."""
    dims = [(n_states, hidden_dim),
            (hidden_dim, hidden_dim * 2),
            (hidden_dim * 2, hidden_dim),
            (hidden_dim, n_actions)]
    params = {}
    for i, (fan_in, fan_out) in enumerate(dims, start=1):
        key, kw, kb = jax.random.split(key, 3)
        bound = 1.0 / (fan_in ** 0.5)
        # stored as (in, out) so the kernel computes x @ W + b
        params[f"w{i}"] = jax.random.uniform(
            kw, (fan_in, fan_out), jnp.float32, -bound, bound)
        params[f"b{i}"] = jax.random.uniform(
            kb, (1, fan_out), jnp.float32, -bound, bound)
    return params


def mlp_reference(x, params):
    h = x
    for i in range(1, 4):
        h = jnp.maximum(h @ params[f"w{i}"] + params[f"b{i}"], 0.0)
    return h @ params["w4"] + params["b4"]


if __name__ == "__main__":
    key = jax.random.PRNGKey(0)
    k_x, k_p = jax.random.split(key)

    batch, n_states, n_actions, hidden_dim = 2, 4, 2, 32
    x = jax.random.normal(k_x, (batch, n_states), jnp.float32)
    params = init_params(k_p, n_states, n_actions, hidden_dim)

    out = mlp_forward(x, params)
    out = jax.block_until_ready(out)

    ref = mlp_reference(x, params)
    assert out.shape == (batch, n_actions)
    assert jnp.allclose(out, ref, atol=1e-5, rtol=1e-5)

    # Sanity-check a larger, non-tile-multiple batch exercises the grid path.
    k_x2 = jax.random.PRNGKey(7)
    x2 = jax.random.normal(k_x2, (1000, n_states), jnp.float32)
    out2 = jax.block_until_ready(mlp_forward(x2, params, tile_m=256))
    ref2 = mlp_reference(x2, params)
    assert out2.shape == (1000, n_actions)
    assert jnp.allclose(out2, ref2, atol=1e-4, rtol=1e-4)

    print("KERNEL_OK")
</pallas_src>

<mosaic_0001>
module attributes {stable_mosaic.version = 11 : i64} {
  func.func @mlp_kernel(%arg0: i32, %arg1: memref<8x4xf32, #tpu.memory_space<vmem>>, %arg2: memref<4x32xf32, #tpu.memory_space<vmem>>, %arg3: memref<1x32xf32, #tpu.memory_space<vmem>>, %arg4: memref<32x64xf32, #tpu.memory_space<vmem>>, %arg5: memref<1x64xf32, #tpu.memory_space<vmem>>, %arg6: memref<64x32xf32, #tpu.memory_space<vmem>>, %arg7: memref<1x32xf32, #tpu.memory_space<vmem>>, %arg8: memref<32x128xf32, #tpu.memory_space<vmem>>, %arg9: memref<1x128xf32, #tpu.memory_space<vmem>>, %arg10: memref<8x128xf32, #tpu.memory_space<vmem>>) attributes {dimension_semantics = [#tpu.dimension_semantics<parallel>], iteration_bounds = array<i64: 1>, scalar_prefetch = 0 : i64, scratch_operands = 0 : i64, tpu.core_type = #tpu.core_type<tc>, window_params = [{transform_indices = @transform_0, window_bounds = array<i64: 8, 4>}, {pipeline_mode = #tpu.pipeline_mode<synchronous>, transform_indices = @transform_1, window_bounds = array<i64: 4, 32>}, {pipeline_mode = #tpu.pipeline_mode<synchronous>, transform_indices = @transform_2, window_bounds = array<i64: 1, 32>}, {pipeline_mode = #tpu.pipeline_mode<synchronous>, transform_indices = @transform_3, window_bounds = array<i64: 32, 64>}, {pipeline_mode = #tpu.pipeline_mode<synchronous>, transform_indices = @transform_4, window_bounds = array<i64: 1, 64>}, {pipeline_mode = #tpu.pipeline_mode<synchronous>, transform_indices = @transform_5, window_bounds = array<i64: 64, 32>}, {pipeline_mode = #tpu.pipeline_mode<synchronous>, transform_indices = @transform_6, window_bounds = array<i64: 1, 32>}, {pipeline_mode = #tpu.pipeline_mode<synchronous>, transform_indices = @transform_7, window_bounds = array<i64: 32, 128>}, {pipeline_mode = #tpu.pipeline_mode<synchronous>, transform_indices = @transform_8, window_bounds = array<i64: 1, 128>}, {transform_indices = @transform_9, window_bounds = array<i64: 8, 128>}]} {
    %c0 = arith.constant 0 : index
    %c0_0 = arith.constant 0 : index
    %0 = vector.load %arg1[%c0, %c0_0] : memref<8x4xf32, #tpu.memory_space<vmem>>, vector<8x4xf32>
    %c0_1 = arith.constant 0 : index
    %c0_2 = arith.constant 0 : index
    %1 = vector.load %arg2[%c0_1, %c0_2] : memref<4x32xf32, #tpu.memory_space<vmem>>, vector<4x32xf32>
    %cst = arith.constant dense<0.000000e+00> : vector<8x32xf32>
    %2 = tpu.matmul %0, %1, %cst {dimension_numbers = #tpu.dot_dimension_numbers<[1], [0], [0], [1], [0, 0, 1, 1], [], []>} : vector<8x4xf32>, vector<4x32xf32>, vector<8x32xf32> -> vector<8x32xf32>
    %c0_3 = arith.constant 0 : index
    %c0_4 = arith.constant 0 : index
    %3 = vector.load %arg3[%c0_3, %c0_4] : memref<1x32xf32, #tpu.memory_space<vmem>>, vector<1x32xf32>
    %4 = vector.broadcast %3 : vector<1x32xf32> to vector<8x32xf32>
    %5 = arith.addf %2, %4 : vector<8x32xf32>
    %cst_5 = arith.constant 0.000000e+00 : f32
    %6 = vector.broadcast %cst_5 : f32 to vector<8x32xf32>
    %7 = arith.maximumf %5, %6 : vector<8x32xf32>
    %c0_6 = arith.constant 0 : index
    %c0_7 = arith.constant 0 : index
    %8 = vector.load %arg4[%c0_6, %c0_7] : memref<32x64xf32, #tpu.memory_space<vmem>>, vector<32x64xf32>
    %cst_8 = arith.constant dense<0.000000e+00> : vector<8x64xf32>
    %9 = tpu.matmul %7, %8, %cst_8 {dimension_numbers = #tpu.dot_dimension_numbers<[1], [0], [0], [1], [0, 0, 1, 1], [], []>} : vector<8x32xf32>, vector<32x64xf32>, vector<8x64xf32> -> vector<8x64xf32>
    %c0_9 = arith.constant 0 : index
    %c0_10 = arith.constant 0 : index
    %10 = vector.load %arg5[%c0_9, %c0_10] : memref<1x64xf32, #tpu.memory_space<vmem>>, vector<1x64xf32>
    %11 = vector.broadcast %10 : vector<1x64xf32> to vector<8x64xf32>
    %12 = arith.addf %9, %11 : vector<8x64xf32>
    %cst_11 = arith.constant 0.000000e+00 : f32
    %13 = vector.broadcast %cst_11 : f32 to vector<8x64xf32>
    %14 = arith.maximumf %12, %13 : vector<8x64xf32>
    %c0_12 = arith.constant 0 : index
    %c0_13 = arith.constant 0 : index
    %15 = vector.load %arg6[%c0_12, %c0_13] : memref<64x32xf32, #tpu.memory_space<vmem>>, vector<64x32xf32>
    %cst_14 = arith.constant dense<0.000000e+00> : vector<8x32xf32>
    %16 = tpu.matmul %14, %15, %cst_14 {dimension_numbers = #tpu.dot_dimension_numbers<[1], [0], [0], [1], [0, 0, 1, 1], [], []>} : vector<8x64xf32>, vector<64x32xf32>, vector<8x32xf32> -> vector<8x32xf32>
    %c0_15 = arith.constant 0 : index
    %c0_16 = arith.constant 0 : index
    %17 = vector.load %arg7[%c0_15, %c0_16] : memref<1x32xf32, #tpu.memory_space<vmem>>, vector<1x32xf32>
    %18 = vector.broadcast %17 : vector<1x32xf32> to vector<8x32xf32>
    %19 = arith.addf %16, %18 : vector<8x32xf32>
    %cst_17 = arith.constant 0.000000e+00 : f32
    %20 = vector.broadcast %cst_17 : f32 to vector<8x32xf32>
    %21 = arith.maximumf %19, %20 : vector<8x32xf32>
    %c0_18 = arith.constant 0 : index
    %c0_19 = arith.constant 0 : index
    %22 = vector.load %arg8[%c0_18, %c0_19] : memref<32x128xf32, #tpu.memory_space<vmem>>, vector<32x128xf32>
    %cst_20 = arith.constant dense<0.000000e+00> : vector<8x128xf32>
    %23 = tpu.matmul %21, %22, %cst_20 {dimension_numbers = #tpu.dot_dimension_numbers<[1], [0], [0], [1], [0, 0, 1, 1], [], []>} : vector<8x32xf32>, vector<32x128xf32>, vector<8x128xf32> -> vector<8x128xf32>
    %c0_21 = arith.constant 0 : index
    %c0_22 = arith.constant 0 : index
    %24 = vector.load %arg9[%c0_21, %c0_22] : memref<1x128xf32, #tpu.memory_space<vmem>>, vector<1x128xf32>
    %25 = vector.broadcast %24 : vector<1x128xf32> to vector<8x128xf32>
    %26 = arith.addf %23, %25 : vector<8x128xf32>
    %c0_23 = arith.constant 0 : index
    %c0_24 = arith.constant 0 : index
    %27 = vector.load %arg10[%c0_23, %c0_24] : memref<8x128xf32, #tpu.memory_space<vmem>>, vector<8x128xf32>
    tpu.vector_store %arg10[%c0_23, %c0_24], %26 {strides = array<i32>} : memref<8x128xf32, #tpu.memory_space<vmem>>, vector<8x128xf32>,
    return
  }
  func.func @transform_0(%arg0: i32) -> (i32, i32) {
    %c0_i32 = arith.constant 0 : i32
    %c0_i32_0 = arith.constant 0 : i32
    return %arg0, %c0_i32 : i32, i32
  }
  func.func @transform_1(%arg0: i32) -> (i32, i32) {
    %c0_i32 = arith.constant 0 : i32
    %c0_i32_0 = arith.constant 0 : i32
    %c0_i32_1 = arith.constant 0 : i32
    return %c0_i32, %c0_i32_0 : i32, i32
  }
  func.func @transform_2(%arg0: i32) -> (i32, i32) {
    %c0_i32 = arith.constant 0 : i32
    %c0_i32_0 = arith.constant 0 : i32
    %c0_i32_1 = arith.constant 0 : i32
    return %c0_i32, %c0_i32_0 : i32, i32
  }
  func.func @transform_3(%arg0: i32) -> (i32, i32) {
    %c0_i32 = arith.constant 0 : i32
    %c0_i32_0 = arith.constant 0 : i32
    %c0_i32_1 = arith.constant 0 : i32
    return %c0_i32, %c0_i32_0 : i32, i32
  }
  func.func @transform_4(%arg0: i32) -> (i32, i32) {
    %c0_i32 = arith.constant 0 : i32
    %c0_i32_0 = arith.constant 0 : i32
    %c0_i32_1 = arith.constant 0 : i32
    return %c0_i32, %c0_i32_0 : i32, i32
  }
  func.func @transform_5(%arg0: i32) -> (i32, i32) {
    %c0_i32 = arith.constant 0 : i32
    %c0_i32_0 = arith.constant 0 : i32
    %c0_i32_1 = arith.constant 0 : i32
    return %c0_i32, %c0_i32_0 : i32, i32
  }
  func.func @transform_6(%arg0: i32) -> (i32, i32) {
    %c0_i32 = arith.constant 0 : i32
    %c0_i32_0 = arith.constant 0 : i32
    %c0_i32_1 = arith.constant 0 : i32
    return %c0_i32, %c0_i32_0 : i32, i32
  }
  func.func @transform_7(%arg0: i32) -> (i32, i32) {
    %c0_i32 = arith.constant 0 : i32
    %c0_i32_0 = arith.constant 0 : i32
    %c0_i32_1 = arith.constant 0 : i32
    return %c0_i32, %c0_i32_0 : i32, i32
  }
  func.func @transform_8(%arg0: i32) -> (i32, i32) {
    %c0_i32 = arith.constant 0 : i32
    %c0_i32_0 = arith.constant 0 : i32
    %c0_i32_1 = arith.constant 0 : i32
    return %c0_i32, %c0_i32_0 : i32, i32
  }
  func.func @transform_9(%arg0: i32) -> (i32, i32) {
    %c0_i32 = arith.constant 0 : i32
    %c0_i32_0 = arith.constant 0 : i32
    return %arg0, %c0_i32 : i32, i32
  }
}

</mosaic_0001>

<bundles_post_ra>
// kernel: tpu_custom_call.1
= control target key start
LH: loop header
LB: loop body
LE: loop exit
PB: predicated region body
PF: predicated region fallthrough
CT: control target
= control target key end

     0   :  { %vm46_vm0 = vcmask 1043456   ;;  %v497_v2 = vmov 0.0   ;;  %vm498_vm1 = vmmov 0   ;;  %vm42_vm2 = vcmask 31744   ;;  %s646_s0 = inlined_call_operand.vmem [shape: f32[8,4], index: 0, kind: input, shape index: {}]   ;;  %s647_s1 = inlined_call_operand.vmem [shape: f32[4,32], index: 1, kind: input, shape index: {}]   ;;  %s648_s2 = inlined_call_operand.vmem [shape: f32[1,32], index: 2, kind: input, shape index: {}]   ;;  %s649_s3 = inlined_call_operand.vmem [shape: f32[32,64], index: 3, kind: input, shape index: {}]   ;;  %s650_s4 = inlined_call_operand.vmem [shape: f32[1,64], index: 4, kind: input, shape index: {}]   ;;  %s651_s5 = inlined_call_operand.vmem [shape: f32[64,32], index: 5, kind: input, shape index: {}]   ;;  %s652_s6 = inlined_call_operand.vmem [shape: f32[1,32], index: 6, kind: input, shape index: {}]   ;;  %s653_s7 = inlined_call_operand.vmem [shape: f32[32,128], index: 7, kind: input, shape index: {}]   ;;  %s654_s8 = inlined_call_operand.vmem [shape: f32[1,128], index: 8, kind: input, shape index: {}]   ;;  %s655_s9 = inlined_call_operand.hbm [shape: f32[8,128], index: 9, kind: output, shape index: {}]  }
   0x1   :  { %v34_v0 = vld [vmem:[%s647_s1] sm:$0xf]  ;;  %426 = vmatprep.subr.mxu0 %v497_v2  ;;  %428 = vmatprep.mubr.msk.f32.mxu0 %vm498_vm1, %v497_v2  ;;  %v124_v3 = vld [vmem:[%s649_s3 + $0x18] sm:$0xff] }
   0x2   :  { %v33_v1 = vld [vmem:[%s646_s0] sm:$0xff] }
   0x3   :  { %14 = vsyncpa [#allocation3], 0  ;;  %427 = vmatpush3.msk.msra.mxu0 %vm46_vm0, %v34_v0  ;;  %431 = vmatprep.subr.mxu1 %v497_v2  ;;  %v123_v4 = vld [vmem:[%s649_s3 + $0x10] sm:$0xff]  ;;  %v122_v5 = vld [vmem:[%s649_s3 + $0x8] sm:$0xff]  ;;  %vm132_vm3 = vcmask 261120   ;;  %vm222_vm4 = vcmask 523264  }
   0x4   :  { %429 = vmatmul.mubr.msk.f32.vlgmr.msra.gmra.mxu0 %vm42_vm2, %v33_v1  ;;  %432 = vmatpush3.msra.mxu1 %v124_v3  ;;  %v121_v6 = vld [vmem:[%s649_s3] sm:$0xff]  ;;  %v214_v7 = vld [vmem:[%s651_s5 + $0x38] sm:$0xff]  ;;  %v213_v8 = vld [vmem:[%s651_s5 + $0x30] sm:$0xff]  ;;  %s499_s24 = smov [#allocation2]  }
   0x5   :  { %433 = vmatprep.subr.mxu1 %v497_v2  ;;  %439 = vmatprep.mubr.msk.f32.mxu1 %vm498_vm1, %v497_v2  ;;  %v212_v9 = vld [vmem:[%s651_s5 + $0x28] sm:$0xff]  ;;  %v211_v10 = vld [vmem:[%s651_s5 + $0x20] sm:$0xff]  ;;  %v210_v11 = vld [vmem:[%s651_s5 + $0x18] sm:$0xff]  ;;  %s388_s3 = sshll.u32 %s499_s24, 4  ;;  %s389_s3 = int_to_ptr.vmem [resolvable:$true] %s388_s3 }
   0x6   :  { %442 = vmatprep.subr.mxu0 %v497_v2  ;;  %458 = vmatprep.mubr.msk.f32.mxu0 %vm498_vm1, %v497_v2  ;;  %v396_v12 = vld [vmem:[%s648_s2] ss:$0 sm:$0xff]  ;;  %v209_v17 = vld [vmem:[%s651_s5 + $0x10] sm:$0xff]  ;;  %v208_v18 = vld [vmem:[%s651_s5 + $0x8] sm:$0xff]  ;;  %p480_p1 = scmp.lt.s32.totalorder %s389_s3, %s389_s3 }
   0x7   :  { %434 = vmatpush3.msra.mxu1 %v123_v4  ;;  %443 = vmatpush3.msra.mxu0 %v214_v7  ;;  %v207_v19 = vld [vmem:[%s651_s5] sm:$0xff]  ;;  %v300_v20 = vld [vmem:[%s653_s7 + $0x18] sm:$0xff]  ;;  %v299_v26 = vld [vmem:[%s653_s7 + $0x10] sm:$0xff] }
   0x8   :  { %435 = vmatprep.subr.mxu1 %v497_v2  ;;  %444 = vmatprep.subr.mxu0 %v497_v2  ;;  %v399_v21 = vld [vmem:[%s650_s4] ss:$0 sm:$0xff]  ;;  %v298_v27 = vld [vmem:[%s653_s7 + $0x8] sm:$0xff] }
   0x9   :  { %436 = vmatpush3.msra.mxu1 %v122_v5  ;;  %445 = vmatpush3.msra.mxu0 %v213_v8  ;;  %v297_v28 = vld [vmem:[%s653_s7] sm:$0xff]  ;;  %s475_s7 = scalar_lea.vmem %s389_s3, 128 }
   0xa   :  { %437 = vmatprep.subr.mxu1 %v497_v2  ;;  %446 = vmatprep.subr.mxu0 %v497_v2  ;;  %v401_v29 = vld [vmem:[%s652_s6] ss:$0 sm:$0xff]  ;;  %p476_p0 = scmp.ne.s32.totalorder %s389_s3, %s475_s7  ;;  %p481_p2 = scmp.lt.s32.totalorder %s475_s7, %s475_s7 }
   0xb   :  { %438 = vmatpush3.msra.mxu1 %v121_v6  ;;  %447 = vmatpush3.msra.mxu0 %v212_v9  ;;  %v403_v34 = vld [vmem:[%s654_s8] ss:$0 sm:$0xff] }
   0xc   :  { %461 = vmatprep.subr.mxu1 %v497_v2  ;;  %448 = vmatprep.subr.mxu0 %v497_v2  ;;  %p482_p3 = por %p481_p2, %p480_p1 }
   0xd   :  { %449 = vmatpush3.msra.mxu0 %v211_v10 }
   0xe   :  { %450 = vmatprep.subr.mxu0 %v497_v2  ;;  %p483_p4 = pnand %p482_p3, %p476_p0 }
   0xf   :  { %451 = vmatpush3.msra.mxu0 %v210_v11 }
  0x10   :  { %452 = vmatprep.subr.mxu0 %v497_v2 }
  0x11   :  { %453 = vmatpush3.msra.mxu0 %v209_v17 }
  0x12   :  { %454 = vmatprep.subr.mxu0 %v497_v2 }
  0x13   :  { %455 = vmatpush3.msra.mxu0 %v208_v18 }
  0x14   :  { %456 = vmatprep.subr.mxu0 %v497_v2 }
  0x15   :  { %457 = vmatpush3.msra.mxu0 %v207_v19 }
  0xc4   :  { %v116_v13 = vpop.f32.mrf.mxu0 }
  0xc5   :  { %v117_v14 = vadd.f32 %v396_v12, %v116_v13 }
  0xc6   :  { %v430_v15 = vpop.f32.mrf.mxu0 }
  0xc7   :  { %v120_v16 = vmax.f32 %v117_v14, 0.0 }
  0xc9   :  { %440 = vmatmul.mubr.msk.f32.vlgmr.msra.gmra.mxu1 %vm132_vm3, %v120_v16 }
  0xca   :  { %469 = vmatprep.mubr.msk.f32.mxu1 %vm498_vm1, %v497_v2  ;;  %462 = vmatpush3.msra.mxu1 %v300_v20 }
  0xcb   :  { %463 = vmatprep.subr.mxu1 %v497_v2 }
  0xcc   :  { %464 = vmatpush3.msra.mxu1 %v299_v26 }
  0xcd   :  { %465 = vmatprep.subr.mxu1 %v497_v2 }
  0xce   :  { %466 = vmatpush3.msra.mxu1 %v298_v27 }
  0xcf   :  { %467 = vmatprep.subr.mxu1 %v497_v2 }
  0xd0   :  { %468 = vmatpush3.msra.mxu1 %v297_v28 }
 0x189   :  { %v202_v22 = vpop.f32.mrf.mxu1 }
 0x18a   :  { %v203_v23 = vadd.f32 %v399_v21, %v202_v22 }
 0x18b   :  { %v441_v24 = vpop.f32.mrf.mxu1 }
 0x18c   :  { %v206_v25 = vmax.f32 %v203_v23, 0.0 }
 0x18e   :  { %459 = vmatmul.mubr.msk.f32.vlgmr.msra.gmra.mxu0 %vm222_vm4, %v206_v25 }
 0x24e   :  { %v292_v30 = vpop.f32.mrf.mxu0 }
 0x24f   :  { %v293_v31 = vadd.f32 %v401_v29, %v292_v30 }
 0x250   :  { %v460_v32 = vpop.f32.mrf.mxu0 }
 0x251   :  { %v296_v33 = vmax.f32 %v293_v31, 0.0 }
 0x253   :  { %470 = vmatmul.mubr.msk.f32.vlgmr.msra.gmra.mxu1 %vm132_vm3, %v296_v33 }
 0x313   :  { %v377_v35 = vpop.f32.mrf.mxu1 }
 0x314   :  { %v378_v36 = vadd.f32 %v403_v34, %v377_v35 }
 0x315   :  { %v471_v37 = vpop.f32.mrf.mxu1 }
 0x316   :  { %381 = vst [vmem:[#allocation2] sm:$0xff] %v378_v36 }
 0x317   :  { %486 = shalt.err (!%p483_p4)
}
 0x318   :  { %391 = dma.vmem_to_hbm [thread:$0]  %s389_s3, 128, %s655_s9, [#allocation3]  }
 0x319   :  { %495 = dma.done.wait [#allocation3], 128  }
 0x31a   :  { %496 = vsyncadd [#allocation3], 4294967168 }
 0x31b   :  { %395 = vsyncpa [#allocation3], 1 }

</bundles_post_ra>
